<compile_context>
chip_gen: v5e
topology: v5e:2x2
jax: 0.10.0
libtpu: 0.0.40
codegen_flags: <defaults>
</compile_context>

<pallas_src>
import functools

import jax
import jax.numpy as jnp
from jax import lax
from jax.experimental import pallas as pl
from jax.experimental.pallas import tpu as pltpu

LANE = 128
SUBLANE = 8
# Total VMEM (bytes) spent on double-buffered input blocks.  The per-input
# block budget scales as 1/(num_preds + 1), so adding preds shrinks blocks
# instead of blowing the scoped-VMEM limit (16 MiB default on v5e).
DEFAULT_INPUT_VMEM_BUDGET = 16 * 1024 * 1024


def _round_up(x, m):
    return ((x + m - 1) // m) * m


def _num_tensorcores():
    """Best-effort TensorCore count (2 on v7x, 1 on v5e/v6e); safe fallback 1."""
    try:
        info = pltpu.get_tpu_info()
    except Exception:
        return 1
    for name in ("num_cores", "core_count", "num_tensorcores",
                 "tensorcore_count", "cores_per_chip", "num_cores_per_chip"):
        val = getattr(info, name, None)
        if val is None:
            continue
        try:
            val = int(val)
        except (TypeError, ValueError):
            continue
        if val > 0:
            return val
    return 1


def _as_3d(x):
    """View x as (G, H, W): collapse leading dims, keep the minor two dims.

    Collapsing only the leading dims never changes the (sublane, lane) layout
    of the minor-two dims, so this reshape is metadata-only (no HBM relayout).
    """
    if x.ndim >= 3:
        lead = 1
        for d in x.shape[:-2]:
            lead *= int(d)
        return x.reshape(lead, x.shape[-2], x.shape[-1])
    if x.ndim == 2:
        return x.reshape(1, x.shape[0], x.shape[1])
    # TODO(synk): rank-0/1 inputs become a single lane-major row; very large
    # 1-D inputs would additionally want lane blocking, not done here.
    return x.reshape(1, 1, max(int(x.size), 1))


def _sums_kernel(*refs, num_preds, g_block, h_block, w, total_g, total_h,
                 g_steps_per_slice, g_steps_total, acc_rows,
                 g_ragged, h_ragged, overflow):
    """Accumulate sum(p*t), sum(p) per pred and sum(t) into VMEM accumulators.

    refs = (*pred_refs, target_ref, inter_ref, psum_ref, tsum_ref)
      pred/target blocks:  (g_block, h_block, W)
      inter/psum blocks:   (1, num_preds, acc_rows, W)  -- resident accumulator
      tsum block:          (1, acc_rows, W)             -- resident accumulator
    """
    pred_refs = refs[:num_preds]
    t_ref = refs[num_preds]
    inter_ref, psum_ref, tsum_ref = refs[num_preds + 1:]

    s = pl.program_id(0)
    gi = pl.program_id(1)
    hi = pl.program_id(2)

    # Zero the per-slice resident accumulators on the first reduction step.
    @pl.when(jnp.logical_and(gi == 0, hi == 0))
    def _():
        inter_ref[...] = jnp.zeros_like(inter_ref)
        psum_ref[...] = jnp.zeros_like(psum_ref)
        tsum_ref[...] = jnp.zeros_like(tsum_ref)

    nominal_g = s * g_steps_per_slice + gi

    def reduce_tile(x):
        # (g_block, h_block, W) -> (acc_rows, W).  The reshape only merges the
        # leading dim with sublane groups of 8 (layout-preserving); the sum
        # over axis 0 is pure VPU vreg adds (no cross-lane movement).
        if h_block % SUBLANE == 0 and h_block != SUBLANE:
            x = x.reshape((g_block * h_block) // SUBLANE, SUBLANE, w)
        return jnp.sum(x, axis=0)

    def accumulate(mask):
        t = t_ref[...].astype(jnp.float32)
        if mask is not None:
            t = jnp.where(mask, t, 0.0)
        tsum_ref[0] += reduce_tile(t)
        for i in range(num_preds):            # static, small
            p = pred_refs[i][...].astype(jnp.float32)
            if mask is not None:
                p = jnp.where(mask, p, 0.0)
            psum_ref[0, i] += reduce_tile(p)
            inter_ref[0, i] += reduce_tile(p * t)

    def make_mask():
        # Chunk-granularity mask: (g_block, h_block, 1), broadcast along lanes.
        m = None
        if g_ragged:
            g_ids = nominal_g * g_block + lax.broadcasted_iota(
                jnp.int32, (g_block, h_block, 1), 0)
            m = g_ids < total_g
        if h_ragged:
            h_ids = hi * h_block + lax.broadcasted_iota(
                jnp.int32, (g_block, h_block, 1), 1)
            hm = h_ids < total_h
            m = hm if m is None else jnp.logical_and(m, hm)
        return m

    edge_conds = []
    if g_ragged:
        edge_conds.append(nominal_g == g_steps_total - 1)
    if h_ragged:
        edge_conds.append(hi == pl.num_programs(2) - 1)

    if not edge_conds and not overflow:
        # Fully aligned grid: every block is interior; no masks, no branches.
        accumulate(None)
        return

    in_range = (nominal_g < g_steps_total) if overflow else None

    if not edge_conds:
        # Only clamped duplicate blocks (odd slice split) need handling: skip
        # their compute entirely so they cannot pollute the accumulators.
        @pl.when(in_range)
        def _():
            accumulate(None)
        return

    is_edge = edge_conds[0]
    for c in edge_conds[1:]:
        is_edge = jnp.logical_or(is_edge, c)

    fast = jnp.logical_not(is_edge)
    slow = is_edge
    if in_range is not None:
        fast = jnp.logical_and(fast, in_range)
        slow = jnp.logical_and(slow, in_range)

    @pl.when(fast)
    def _():
        accumulate(None)

    @pl.when(slow)
    def _():
        accumulate(make_mask())


def _soft_iou_sums(preds, target, *, block_budget_bytes=None):
    """One fused pallas_call: returns (inter[P], psum[P], tsum) as float32."""
    num_preds = len(preds)
    assert num_preds >= 1
    t3 = _as_3d(target)
    p3s = [_as_3d(p) for p in preds]
    for p3 in p3s:
        assert p3.shape == t3.shape, "all preds must match the target shape"

    G, H, W = (int(d) for d in t3.shape)

    if block_budget_bytes is None:
        block_budget_bytes = DEFAULT_INPUT_VMEM_BUDGET
    # Per-input, per-pipeline-buffer budget: (P+1) inputs, double-buffered.
    per_block_budget = max(block_budget_bytes // (2 * (num_preds + 1)),
                           64 * 1024)

    w_pad = _round_up(W, LANE)
    h_pad = _round_up(H, SUBLANE)
    slice_bytes = h_pad * w_pad * 4             # one (1, H, W) slab as f32

    if slice_bytes <= per_block_budget:
        h_block = H
        g_block = max(1, min(G, per_block_budget // slice_bytes))
    else:
        g_block = 1
        rows = (per_block_budget // (w_pad * 4)) // SUBLANE * SUBLANE
        h_block = min(h_pad, max(SUBLANE, rows))
        if h_block >= H:
            h_block = H

    g_steps_total = pl.cdiv(G, g_block)
    h_steps = pl.cdiv(H, h_block)

    # Split the leading (G-block) axis across TensorCores only when the chip
    # actually has more than one (v7x); v5e / v6e stay single-slice.
    num_slices = max(1, min(_num_tensorcores(), g_steps_total))
    g_steps_per_slice = pl.cdiv(g_steps_total, num_slices)

    g_ragged = (G % g_block) != 0
    h_ragged = (H % h_block) != 0
    overflow = num_slices * g_steps_per_slice > g_steps_total

    acc_rows = SUBLANE if (h_block % SUBLANE == 0) else h_block

    def in_index(s, gi, hi):
        blk = s * g_steps_per_slice + gi
        if overflow:
            # Keep the DMA in bounds; the kernel skips compute on duplicates.
            blk = jnp.minimum(blk, g_steps_total - 1)
        return (blk, hi, 0)

    in_spec = pl.BlockSpec((g_block, h_block, W), in_index)

    kernel = functools.partial(
        _sums_kernel,
        num_preds=num_preds, g_block=g_block, h_block=h_block, w=W,
        total_g=G, total_h=H,
        g_steps_per_slice=g_steps_per_slice, g_steps_total=g_steps_total,
        acc_rows=acc_rows,
        g_ragged=g_ragged, h_ragged=h_ragged, overflow=overflow)

    # Explicit scoped-VMEM limit: double-buffered inputs + accumulators + f32
    # temporaries, with headroom; deterministic across chip generations.
    itemsize = max(int(jnp.dtype(t3.dtype).itemsize),
                   max(int(jnp.dtype(p.dtype).itemsize) for p in p3s))
    in_block_bytes = g_block * _round_up(h_block, SUBLANE) * w_pad * itemsize
    f32_block_bytes = g_block * _round_up(h_block, SUBLANE) * w_pad * 4
    acc_bytes = (2 * num_preds + 1) * _round_up(acc_rows, SUBLANE) * w_pad * 4
    est = ((num_preds + 1) * 2 * in_block_bytes
           + 2 * acc_bytes + 4 * f32_block_bytes)
    vmem_limit = int(min(max(est + 8 * 1024 * 1024, 24 * 1024 * 1024),
                         56 * 1024 * 1024))

    inter, psum, tsum = pl.pallas_call(
        kernel,
        out_shape=(
            jax.ShapeDtypeStruct((num_slices, num_preds, acc_rows, W),
                                 jnp.float32),
            jax.ShapeDtypeStruct((num_slices, num_preds, acc_rows, W),
                                 jnp.float32),
            jax.ShapeDtypeStruct((num_slices, acc_rows, W), jnp.float32),
        ),
        grid_spec=pltpu.PrefetchScalarGridSpec(
            num_scalar_prefetch=0,
            grid=(num_slices, g_steps_per_slice, h_steps),
            in_specs=[in_spec] * (num_preds + 1),
            out_specs=[
                pl.BlockSpec((1, num_preds, acc_rows, W),
                             lambda s, gi, hi: (s, 0, 0, 0)),
                pl.BlockSpec((1, num_preds, acc_rows, W),
                             lambda s, gi, hi: (s, 0, 0, 0)),
                pl.BlockSpec((1, acc_rows, W),
                             lambda s, gi, hi: (s, 0, 0)),
            ],
        ),
        compiler_params=pltpu.CompilerParams(
            dimension_semantics=("parallel", "arbitrary", "arbitrary"),
            vmem_limit_bytes=vmem_limit,
        ),
    )(*p3s, t3)

    # Tiny final reduction of the lane-dense partials.
    inter_tot = inter.sum(axis=(0, 2, 3))   # (num_preds,)
    psum_tot = psum.sum(axis=(0, 2, 3))     # (num_preds,)
    tsum_tot = tsum.sum()                   # scalar
    return inter_tot, psum_tot, tsum_tot


@functools.partial(jax.jit, static_argnames=("block_budget_bytes",))
def soft_iou_loss(preds, target, block_budget_bytes=None):
    """JAX/Pallas equivalent of SoftIoULoss.forward(preds, target)."""
    smooth = 1.0
    inter, psum, tsum = _soft_iou_sums(list(preds), target,
                                       block_budget_bytes=block_budget_bytes)
    iou = (inter + smooth) / (psum + tsum - inter + smooth)
    return jnp.mean(1.0 - iou)


def _soft_iou_loss_ref(preds, target):
    """Pure-JAX reference for sanity checking."""
    smooth = 1.0
    loss = 0.0
    for pred in preds:
        p = pred.astype(jnp.float32)
        t = target.astype(jnp.float32)
        inter = jnp.sum(p * t)
        iou = (inter + smooth) / (jnp.sum(p) + jnp.sum(t) - inter + smooth)
        loss = loss + (1.0 - iou)
    return loss / len(preds)


if __name__ == "__main__":
    key = jax.random.PRNGKey(0)
    k1, k2, k3 = jax.random.split(key, 3)

    # Primary case: NCHW, matching the PyTorch convention.
    B, C, H, W = 2, 4, 16, 16
    pred1 = jax.nn.sigmoid(jax.random.normal(k1, (B, C, H, W), jnp.float32))
    pred2 = jax.nn.sigmoid(jax.random.normal(k2, (B, C, H, W), jnp.float32))
    target = (jax.random.uniform(k3, (B, C, H, W), jnp.float32) > 0.5).astype(
        jnp.float32)
    preds = (pred1, pred2)

    loss = jax.block_until_ready(soft_iou_loss(preds, target))
    ref = _soft_iou_loss_ref(preds, target)
    assert jnp.allclose(loss, ref, rtol=1e-5, atol=1e-5), (loss, ref)

    # Case 2: larger spatial dims (W not a multiple of 128), default blocking.
    k4, k5, k6 = jax.random.split(jax.random.PRNGKey(1), 3)
    B2, C2, H2, W2 = 2, 4, 144, 144
    pred_a = jax.nn.sigmoid(jax.random.normal(k4, (B2, C2, H2, W2), jnp.float32))
    pred_b = jax.nn.sigmoid(jax.random.normal(k5, (B2, C2, H2, W2), jnp.float32))
    target2 = (jax.random.uniform(k6, (B2, C2, H2, W2), jnp.float32) > 0.5
               ).astype(jnp.float32)
    preds2 = (pred_a, pred_b)

    loss2 = jax.block_until_ready(soft_iou_loss(preds2, target2))
    ref2 = _soft_iou_loss_ref(preds2, target2)
    assert jnp.allclose(loss2, ref2, rtol=1e-5, atol=1e-5), (loss2, ref2)

    # Case 3: tiny block budget forces the multi-block reduction grid and the
    # ragged-H edge-mask path (h_block < H, H % h_block != 0).
    loss3 = jax.block_until_ready(
        soft_iou_loss(preds2, target2, block_budget_bytes=384 * 1024))
    assert jnp.allclose(loss3, ref2, rtol=1e-5, atol=1e-5), (loss3, ref2)

    # Case 4: ragged leading (G) blocks exercise the g edge-mask path.
    k7, _, k9 = jax.random.split(jax.random.PRNGKey(2), 3)
    B3, C3, H3, W3 = 3, 1, 80, 144
    pred_c = jax.nn.sigmoid(jax.random.normal(k7, (B3, C3, H3, W3), jnp.float32))
    target3 = (jax.random.uniform(k9, (B3, C3, H3, W3), jnp.float32) > 0.5
               ).astype(jnp.float32)
    preds3 = (pred_c,)
    loss4 = jax.block_until_ready(
        soft_iou_loss(preds3, target3, block_budget_bytes=640 * 1024))
    ref4 = _soft_iou_loss_ref(preds3, target3)
    assert jnp.allclose(loss4, ref4, rtol=1e-5, atol=1e-5), (loss4, ref4)

    print("KERNEL_OK")
</pallas_src>

<mosaic_0001>
module attributes {stable_mosaic.version = 11 : i64} {
  func.func @_sums_kernel(%arg0: i32, %arg1: i32, %arg2: i32, %arg3: memref<8x16x16xf32, #tpu.memory_space<vmem>>, %arg4: memref<8x16x16xf32, #tpu.memory_space<vmem>>, %arg5: memref<8x16x16xf32, #tpu.memory_space<vmem>>, %arg6: memref<1x2x8x16xf32, #tpu.memory_space<vmem>>, %arg7: memref<1x2x8x16xf32, #tpu.memory_space<vmem>>, %arg8: memref<1x8x16xf32, #tpu.memory_space<vmem>>) attributes {dimension_semantics = [#tpu.dimension_semantics<parallel>, #tpu.dimension_semantics<arbitrary>, #tpu.dimension_semantics<arbitrary>], iteration_bounds = array<i64: 1, 1, 1>, scalar_prefetch = 0 : i64, scratch_operands = 0 : i64, tpu.core_type = #tpu.core_type<tc>, window_params = [{transform_indices = @transform_0, window_bounds = array<i64: 8, 16, 16>}, {transform_indices = @transform_1, window_bounds = array<i64: 8, 16, 16>}, {transform_indices = @transform_2, window_bounds = array<i64: 8, 16, 16>}, {transform_indices = @transform_3, window_bounds = array<i64: 1, 2, 8, 16>}, {transform_indices = @transform_4, window_bounds = array<i64: 1, 2, 8, 16>}, {transform_indices = @transform_5, window_bounds = array<i64: 1, 8, 16>}]} {
    %c0_i32 = arith.constant 0 : i32
    %0 = arith.cmpi eq, %arg1, %c0_i32 : i32
    %c0_i32_0 = arith.constant 0 : i32
    %1 = arith.cmpi eq, %arg2, %c0_i32_0 : i32
    %2 = arith.andi %0, %1 : i1
    %3 = arith.extui %2 : i1 to i32
    %c0_i32_1 = arith.constant 0 : i32
    %4 = arith.cmpi ne, %3, %c0_i32_1 : i32
    scf.if %4 {
      %cst_51 = arith.constant 0.000000e+00 : f32
      %50 = vector.broadcast %cst_51 : f32 to vector<1x2x8x16xf32>
      %c0_52 = arith.constant 0 : index
      %c0_53 = arith.constant 0 : index
      %c0_54 = arith.constant 0 : index
      %c0_55 = arith.constant 0 : index
      %51 = vector.load %arg6[%c0_52, %c0_53, %c0_54, %c0_55] : memref<1x2x8x16xf32, #tpu.memory_space<vmem>>, vector<1x2x8x16xf32>
      tpu.vector_store %arg6[%c0_52, %c0_53, %c0_54, %c0_55], %50 {strides = array<i32>} : memref<1x2x8x16xf32, #tpu.memory_space<vmem>>, vector<1x2x8x16xf32>,
      %cst_56 = arith.constant 0.000000e+00 : f32
      %52 = vector.broadcast %cst_56 : f32 to vector<1x2x8x16xf32>
      %c0_57 = arith.constant 0 : index
      %c0_58 = arith.constant 0 : index
      %c0_59 = arith.constant 0 : index
      %c0_60 = arith.constant 0 : index
      %53 = vector.load %arg7[%c0_57, %c0_58, %c0_59, %c0_60] : memref<1x2x8x16xf32, #tpu.memory_space<vmem>>, vector<1x2x8x16xf32>
      tpu.vector_store %arg7[%c0_57, %c0_58, %c0_59, %c0_60], %52 {strides = array<i32>} : memref<1x2x8x16xf32, #tpu.memory_space<vmem>>, vector<1x2x8x16xf32>,
      %cst_61 = arith.constant 0.000000e+00 : f32
      %54 = vector.broadcast %cst_61 : f32 to vector<1x8x16xf32>
      %c0_62 = arith.constant 0 : index
      %c0_63 = arith.constant 0 : index
      %c0_64 = arith.constant 0 : index
      %55 = vector.load %arg8[%c0_62, %c0_63, %c0_64] : memref<1x8x16xf32, #tpu.memory_space<vmem>>, vector<1x8x16xf32>
      tpu.vector_store %arg8[%c0_62, %c0_63, %c0_64], %54 {strides = array<i32>} : memref<1x8x16xf32, #tpu.memory_space<vmem>>, vector<1x8x16xf32>,
    } else {
    }
    %c0 = arith.constant 0 : index
    %c0_2 = arith.constant 0 : index
    %c0_3 = arith.constant 0 : index
    %5 = vector.load %arg5[%c0, %c0_2, %c0_3] : memref<8x16x16xf32, #tpu.memory_space<vmem>>, vector<8x16x16xf32>
    %c0_4 = arith.constant 0 : index
    %c0_5 = arith.constant 0 : index
    %c0_6 = arith.constant 0 : index
    %6 = vector.load %arg8[%c0_4, %c0_5, %c0_6] : memref<1x8x16xf32, #tpu.memory_space<vmem>>, vector<1x8x16xf32>
    %7 = vector.shape_cast %6 : vector<1x8x16xf32> to vector<8x16xf32>
    %8 = vector.shape_cast %5 : vector<8x16x16xf32> to vector<16x8x16xf32>
    %cst = arith.constant dense<0.000000e+00> : vector<8x16xf32>
    %9 = vector.multi_reduction <add>, %8, %cst [0] : vector<16x8x16xf32> to vector<8x16xf32>
    %10 = arith.addf %7, %9 : vector<8x16xf32>
    %c0_7 = arith.constant 0 : index
    %c0_8 = arith.constant 0 : index
    %c0_9 = arith.constant 0 : index
    %11 = vector.load %arg8[%c0_7, %c0_8, %c0_9] : memref<1x8x16xf32, #tpu.memory_space<vmem>>, vector<1x8x16xf32>
    %12 = vector.shape_cast %11 : vector<1x8x16xf32> to vector<8x16xf32>
    %13 = vector.shape_cast %10 : vector<8x16xf32> to vector<1x8x16xf32>
    tpu.vector_store %arg8[%c0_7, %c0_8, %c0_9], %13 {strides = array<i32>} : memref<1x8x16xf32, #tpu.memory_space<vmem>>, vector<1x8x16xf32>,
    %c0_10 = arith.constant 0 : index
    %c0_11 = arith.constant 0 : index
    %c0_12 = arith.constant 0 : index
    %14 = vector.load %arg3[%c0_10, %c0_11, %c0_12] : memref<8x16x16xf32, #tpu.memory_space<vmem>>, vector<8x16x16xf32>
    %c0_13 = arith.constant 0 : index
    %c0_14 = arith.constant 0 : index
    %c0_15 = arith.constant 0 : index
    %c0_16 = arith.constant 0 : index
    %15 = vector.load %arg7[%c0_13, %c0_14, %c0_15, %c0_16] : memref<1x2x8x16xf32, #tpu.memory_space<vmem>>, vector<1x1x8x16xf32>
    %16 = vector.shape_cast %15 : vector<1x1x8x16xf32> to vector<8x16xf32>
    %17 = vector.shape_cast %14 : vector<8x16x16xf32> to vector<16x8x16xf32>
    %cst_17 = arith.constant dense<0.000000e+00> : vector<8x16xf32>
    %18 = vector.multi_reduction <add>, %17, %cst_17 [0] : vector<16x8x16xf32> to vector<8x16xf32>
    %19 = arith.addf %16, %18 : vector<8x16xf32>
    %c0_18 = arith.constant 0 : index
    %c0_19 = arith.constant 0 : index
    %c0_20 = arith.constant 0 : index
    %c0_21 = arith.constant 0 : index
    %20 = vector.load %arg7[%c0_18, %c0_19, %c0_20, %c0_21] : memref<1x2x8x16xf32, #tpu.memory_space<vmem>>, vector<1x1x8x16xf32>
    %21 = vector.shape_cast %20 : vector<1x1x8x16xf32> to vector<8x16xf32>
    %22 = vector.shape_cast %19 : vector<8x16xf32> to vector<1x1x8x16xf32>
    tpu.vector_store %arg7[%c0_18, %c0_19, %c0_20, %c0_21], %22 {strides = array<i32>} : memref<1x2x8x16xf32, #tpu.memory_space<vmem>>, vector<1x1x8x16xf32>,
    %c0_22 = arith.constant 0 : index
    %c0_23 = arith.constant 0 : index
    %c0_24 = arith.constant 0 : index
    %c0_25 = arith.constant 0 : index
    %23 = vector.load %arg6[%c0_22, %c0_23, %c0_24, %c0_25] : memref<1x2x8x16xf32, #tpu.memory_space<vmem>>, vector<1x1x8x16xf32>
    %24 = vector.shape_cast %23 : vector<1x1x8x16xf32> to vector<8x16xf32>
    %25 = arith.mulf %14, %5 : vector<8x16x16xf32>
    %26 = vector.shape_cast %25 : vector<8x16x16xf32> to vector<16x8x16xf32>
    %cst_26 = arith.constant dense<0.000000e+00> : vector<8x16xf32>
    %27 = vector.multi_reduction <add>, %26, %cst_26 [0] : vector<16x8x16xf32> to vector<8x16xf32>
    %28 = arith.addf %24, %27 : vector<8x16xf32>
    %c0_27 = arith.constant 0 : index
    %c0_28 = arith.constant 0 : index
    %c0_29 = arith.constant 0 : index
    %c0_30 = arith.constant 0 : index
    %29 = vector.load %arg6[%c0_27, %c0_28, %c0_29, %c0_30] : memref<1x2x8x16xf32, #tpu.memory_space<vmem>>, vector<1x1x8x16xf32>
    %30 = vector.shape_cast %29 : vector<1x1x8x16xf32> to vector<8x16xf32>
    %31 = vector.shape_cast %28 : vector<8x16xf32> to vector<1x1x8x16xf32>
    tpu.vector_store %arg6[%c0_27, %c0_28, %c0_29, %c0_30], %31 {strides = array<i32>} : memref<1x2x8x16xf32, #tpu.memory_space<vmem>>, vector<1x1x8x16xf32>,
    %c0_31 = arith.constant 0 : index
    %c0_32 = arith.constant 0 : index
    %c0_33 = arith.constant 0 : index
    %32 = vector.load %arg4[%c0_31, %c0_32, %c0_33] : memref<8x16x16xf32, #tpu.memory_space<vmem>>, vector<8x16x16xf32>
    %c0_34 = arith.constant 0 : index
    %c1 = arith.constant 1 : index
    %c0_35 = arith.constant 0 : index
    %c0_36 = arith.constant 0 : index
    %33 = vector.load %arg7[%c0_34, %c1, %c0_35, %c0_36] : memref<1x2x8x16xf32, #tpu.memory_space<vmem>>, vector<1x1x8x16xf32>
    %34 = vector.shape_cast %33 : vector<1x1x8x16xf32> to vector<8x16xf32>
    %35 = vector.shape_cast %32 : vector<8x16x16xf32> to vector<16x8x16xf32>
    %cst_37 = arith.constant dense<0.000000e+00> : vector<8x16xf32>
    %36 = vector.multi_reduction <add>, %35, %cst_37 [0] : vector<16x8x16xf32> to vector<8x16xf32>
    %37 = arith.addf %34, %36 : vector<8x16xf32>
    %c0_38 = arith.constant 0 : index
    %c1_39 = arith.constant 1 : index
    %c0_40 = arith.constant 0 : index
    %c0_41 = arith.constant 0 : index
    %38 = vector.load %arg7[%c0_38, %c1_39, %c0_40, %c0_41] : memref<1x2x8x16xf32, #tpu.memory_space<vmem>>, vector<1x1x8x16xf32>
    %39 = vector.shape_cast %38 : vector<1x1x8x16xf32> to vector<8x16xf32>
    %40 = vector.shape_cast %37 : vector<8x16xf32> to vector<1x1x8x16xf32>
    tpu.vector_store %arg7[%c0_38, %c1_39, %c0_40, %c0_41], %40 {strides = array<i32>} : memref<1x2x8x16xf32, #tpu.memory_space<vmem>>, vector<1x1x8x16xf32>,
    %c0_42 = arith.constant 0 : index
    %c1_43 = arith.constant 1 : index
    %c0_44 = arith.constant 0 : index
    %c0_45 = arith.constant 0 : index
    %41 = vector.load %arg6[%c0_42, %c1_43, %c0_44, %c0_45] : memref<1x2x8x16xf32, #tpu.memory_space<vmem>>, vector<1x1x8x16xf32>
    %42 = vector.shape_cast %41 : vector<1x1x8x16xf32> to vector<8x16xf32>
    %43 = arith.mulf %32, %5 : vector<8x16x16xf32>
    %44 = vector.shape_cast %43 : vector<8x16x16xf32> to vector<16x8x16xf32>
    %cst_46 = arith.constant dense<0.000000e+00> : vector<8x16xf32>
    %45 = vector.multi_reduction <add>, %44, %cst_46 [0] : vector<16x8x16xf32> to vector<8x16xf32>
    %46 = arith.addf %42, %45 : vector<8x16xf32>
    %c0_47 = arith.constant 0 : index
    %c1_48 = arith.constant 1 : index
    %c0_49 = arith.constant 0 : index
    %c0_50 = arith.constant 0 : index
    %47 = vector.load %arg6[%c0_47, %c1_48, %c0_49, %c0_50] : memref<1x2x8x16xf32, #tpu.memory_space<vmem>>, vector<1x1x8x16xf32>
    %48 = vector.shape_cast %47 : vector<1x1x8x16xf32> to vector<8x16xf32>
    %49 = vector.shape_cast %46 : vector<8x16xf32> to vector<1x1x8x16xf32>
    tpu.vector_store %arg6[%c0_47, %c1_48, %c0_49, %c0_50], %49 {strides = array<i32>} : memref<1x2x8x16xf32, #tpu.memory_space<vmem>>, vector<1x1x8x16xf32>,
    return
  }
  func.func @transform_0(%arg0: i32, %arg1: i32, %arg2: i32) -> (i32, i32, i32) {
    %c1_i32 = arith.constant 1 : i32
    %0 = arith.muli %arg0, %c1_i32 : i32
    %1 = arith.addi %0, %arg1 : i32
    %c0_i32 = arith.constant 0 : i32
    %c0_i32_0 = arith.constant 0 : i32
    return %1, %arg2, %c0_i32 : i32, i32, i32
  }
  func.func @transform_1(%arg0: i32, %arg1: i32, %arg2: i32) -> (i32, i32, i32) {
    %c1_i32 = arith.constant 1 : i32
    %0 = arith.muli %arg0, %c1_i32 : i32
    %1 = arith.addi %0, %arg1 : i32
    %c0_i32 = arith.constant 0 : i32
    %c0_i32_0 = arith.constant 0 : i32
    return %1, %arg2, %c0_i32 : i32, i32, i32
  }
  func.func @transform_2(%arg0: i32, %arg1: i32, %arg2: i32) -> (i32, i32, i32) {
    %c1_i32 = arith.constant 1 : i32
    %0 = arith.muli %arg0, %c1_i32 : i32
    %1 = arith.addi %0, %arg1 : i32
    %c0_i32 = arith.constant 0 : i32
    %c0_i32_0 = arith.constant 0 : i32
    return %1, %arg2, %c0_i32 : i32, i32, i32
  }
  func.func @transform_3(%arg0: i32, %arg1: i32, %arg2: i32) -> (i32, i32, i32, i32) {
    %c0_i32 = arith.constant 0 : i32
    %c0_i32_0 = arith.constant 0 : i32
    %c0_i32_1 = arith.constant 0 : i32
    %c0_i32_2 = arith.constant 0 : i32
    return %arg0, %c0_i32, %c0_i32_0, %c0_i32_1 : i32, i32, i32, i32
  }
  func.func @transform_4(%arg0: i32, %arg1: i32, %arg2: i32) -> (i32, i32, i32, i32) {
    %c0_i32 = arith.constant 0 : i32
    %c0_i32_0 = arith.constant 0 : i32
    %c0_i32_1 = arith.constant 0 : i32
    %c0_i32_2 = arith.constant 0 : i32
    return %arg0, %c0_i32, %c0_i32_0, %c0_i32_1 : i32, i32, i32, i32
  }
  func.func @transform_5(%arg0: i32, %arg1: i32, %arg2: i32) -> (i32, i32, i32) {
    %c0_i32 = arith.constant 0 : i32
    %c0_i32_0 = arith.constant 0 : i32
    %c0_i32_1 = arith.constant 0 : i32
    return %arg0, %c0_i32, %c0_i32_0 : i32, i32, i32
  }
}

</mosaic_0001>

<bundles_post_ra>
// kernel: soft_iou_loss.1
= control target key start
LH: loop header
LB: loop body
LE: loop exit
PB: predicated region body
PF: predicated region fallthrough
CT: control target
= control target key end

     0   :  { %11 = vsyncpa [#allocation3], 0  ;;  %s720_s0 = inlined_call_operand.hbm [shape: f32[8,16,16], index: 0, kind: input, shape index: {}]   ;;  %s721_s1 = inlined_call_operand.hbm [shape: f32[8,16,16], index: 1, kind: input, shape index: {}]   ;;  %s722_s2 = inlined_call_operand.hbm [shape: f32[8,16,16], index: 2, kind: input, shape index: {}]   ;;  %s723_s3 = inlined_call_operand.vmem [shape: f32[1,2,8,16], index: 3, kind: output, shape index: {0}]   ;;  %s724_s4 = inlined_call_operand.vmem [shape: f32[1,2,8,16], index: 4, kind: output, shape index: {1}]   ;;  %s725_s5 = inlined_call_operand.vmem [shape: f32[1,8,16], index: 5, kind: output, shape index: {2}]  }
   0x1   :  { %12 = vsyncpa [#allocation5], 0  ;;  %s40_s20 = sshll.u32 %s721_s1, 4  ;;  %s450_s21 = smov [#allocation4]   ;;  %s41_s20 = int_to_ptr.hbm [resolvable:$true] %s40_s20 }
   0x2   :  { %s42_s22 = sshll.u32 %s450_s21, 4  ;;  %s22_s25 = sshll.u32 %s720_s0, 4  ;;  %s43_s22 = int_to_ptr.vmem [resolvable:$true] %s42_s22  ;;  %s23_s25 = int_to_ptr.hbm [resolvable:$true] %s22_s25 }
   0x3   :  { %s451_s26 = smov 128   ;;  %s452_s27 = smov 8  }
   0x4   :  { %48 = dma.hbm_to_vmem [thread:$0]  %s41_s20, 2048, %s43_s22, [#allocation5], %s451_s26, %s451_s26, %s452_s27  }
   0x5   :  { %s453_s28 = smov [#allocation2]   ;;  %s58_s7 = sshll.u32 %s722_s2, 4  ;;  %s59_s7 = int_to_ptr.hbm [resolvable:$true] %s58_s7 }
   0x6   :  { %s24_s29 = sshll.u32 %s453_s28, 4  ;;  %s454_s1 = smov [#allocation6]   ;;  %s25_s29 = int_to_ptr.vmem [resolvable:$true] %s24_s29 }
   0x7   :  { %30 = dma.hbm_to_vmem [thread:$0]  %s23_s25, 2048, %s25_s29, [#allocation3], %s451_s26, %s451_s26, %s452_s27  }
   0x8   :  { %s60_s8 = sshll.u32 %s454_s1, 4  ;;  %s61_s8 = int_to_ptr.vmem [resolvable:$true] %s60_s8 }
   0x9   :  { %66 = dma.hbm_to_vmem [thread:$0]  %s59_s7, 2048, %s61_s8, [#allocation5], %s451_s26, %s451_s26, %s452_s27  }
   0xa   :  { %446 = dma.done.wait [#allocation3], 2048  }
   0xb   :  { %447 = vsyncadd [#allocation3], 4294965248 }
   0xc   :  { %448 = dma.done.wait [#allocation5], 4096  }
   0xd   :  { %449 = vsyncadd [#allocation5], 4294963200  ;;  %vm91_vm0 = vcmask 130048   ;;  %v455_v0 = vmov 0.0   ;;  %v515_v1 = vld [vmem:[#allocation6] sm:$0xff]  ;;  %v517_v2 = vld [vmem:[#allocation6 + $0x8] sm:$0xff] }
   0xe   :  { %92 = vst.msk [vmem:[%s723_s3] sm:$0xff] %vm91_vm0, %v455_v0  ;;  %v519_v3 = vld [vmem:[#allocation6 + $0x10] sm:$0xff]  ;;  %v115_v4 = vsel %vm91_vm0, %v515_v1, 0.0  ;;  %v116_v5 = vsel %vm91_vm0, %v517_v2, 0.0  ;;  %v527_v7 = vld [vmem:[#allocation6 + $0x18] sm:$0xff]  ;;  %v531_v10 = vld [vmem:[#allocation6 + $0x20] sm:$0xff] }
   0xf   :  { %93 = vst.msk [vmem:[%s723_s3 + $0x8] sm:$0xff] %vm91_vm0, %v455_v0  ;;  %v118_v6 = vsel %vm91_vm0, %v519_v3, 0.0  ;;  %v117_v8 = vadd.f32 %v116_v5, %v115_v4  ;;  %v120_v9 = vsel %vm91_vm0, %v527_v7, 0.0  ;;  %v122_v12 = vsel %vm91_vm0, %v531_v10, 0.0  ;;  %v148_v13 = vld [vmem:[#allocation2] sm:$0xff]  ;;  %v535_v14 = vld [vmem:[#allocation6 + $0x28] sm:$0xff] }
  0x10   :  { %94 = vst.msk [vmem:[%s724_s4] sm:$0xff] %vm91_vm0, %v455_v0  ;;  %v149_v16 = vld [vmem:[#allocation2 + $0x8] sm:$0xff]  ;;  %v150_v17 = vld [vmem:[#allocation2 + $0x10] sm:$0xff]  ;;  %v165_v18 = vsel %vm91_vm0, %v148_v13, 0.0  ;;  %v124_v19 = vsel %vm91_vm0, %v535_v14, 0.0  ;;  %v151_v24 = vld [vmem:[#allocation2 + $0x18] sm:$0xff]  ;;  %v199_v46 = vmul.f32 %v148_v13, %v515_v1 }
  0x11   :  { %95 = vst.msk [vmem:[%s724_s4 + $0x8] sm:$0xff] %vm91_vm0, %v455_v0  ;;  %v119_v11 = vadd.f32 %v118_v6, %v117_v8  ;;  %v166_v20 = vsel %vm91_vm0, %v149_v16, 0.0  ;;  %v168_v21 = vsel %vm91_vm0, %v150_v17, 0.0  ;;  %v542_v22 = vld [vmem:[#allocation6 + $0x30] sm:$0xff]  ;;  %v170_v27 = vsel %vm91_vm0, %v151_v24, 0.0  ;;  %v547_v28 = vld [vmem:[#allocation6 + $0x38] sm:$0xff] }
  0x12   :  { %96 = vst.msk [vmem:[%s725_s5] sm:$0xff] %vm91_vm0, %v455_v0  ;;  %v167_v25 = vadd.f32 %v166_v20, %v165_v18  ;;  %v126_v26 = vsel %vm91_vm0, %v542_v22, 0.0  ;;  %v549_v29 = vld [vmem:[#allocation6 + $0x40] sm:$0xff]  ;;  %v551_v33 = vld [vmem:[#allocation6 + $0x48] sm:$0xff]  ;;  %v553_v34 = vld [vmem:[#allocation6 + $0x50] sm:$0xff]  ;;  %v128_v35 = vsel %vm91_vm0, %v547_v28, 0.0  ;;  %v200_v47 = vmul.f32 %v149_v16, %v517_v2 }
  0x13   :  { %v121_v15 = vadd.f32 %v120_v9, %v119_v11  ;;  %v152_v31 = vld [vmem:[#allocation2 + $0x20] sm:$0xff]  ;;  %v130_v36 = vsel %vm91_vm0, %v549_v29, 0.0  ;;  %v132_v39 = vsel %vm91_vm0, %v551_v33, 0.0  ;;  %v134_v40 = vsel %vm91_vm0, %v553_v34, 0.0  ;;  %v153_v41 = vld [vmem:[#allocation2 + $0x28] sm:$0xff]  ;;  %v564_v43 = vld [vmem:[#allocation6 + $0x58] sm:$0xff] }
  0x14   :  { %v169_v32 = vadd.f32 %v168_v21, %v167_v25  ;;  %v172_v37 = vsel %vm91_vm0, %v152_v31, 0.0  ;;  %v566_v44 = vld [vmem:[#allocation6 + $0x60] sm:$0xff]  ;;  %v174_v45 = vsel %vm91_vm0, %v153_v41, 0.0  ;;  %v201_v48 = vmul.f32 %v150_v17, %v519_v3  ;;  %v572_v49 = vld [vmem:[#allocation6 + $0x68] sm:$0xff]  ;;  %v574_v50 = vld [vmem:[#allocation6 + $0x70] sm:$0xff] }
  0x15   :  { %v123_v23 = vadd.f32 %v122_v12, %v121_v15  ;;  %v136_v52 = vsel %vm91_vm0, %v564_v43, 0.0  ;;  %v138_v53 = vsel %vm91_vm0, %v566_v44, 0.0  ;;  %v154_v54 = vld [vmem:[#allocation2 + $0x30] sm:$0xff]  ;;  %v580_v56 = vld [vmem:[#allocation6 + $0x78] sm:$0xff]  ;;  %v140_v57 = vsel %vm91_vm0, %v572_v49, 0.0  ;;  %v156_v5 = vld [vmem:[#allocation2 + $0x40] sm:$0xff] }
  0x16   :  { %v171_v42 = vadd.f32 %v170_v27, %v169_v32  ;;  %v586_v58 = vsel %vm91_vm0, %v574_v50, 0.0  ;;  %v155_v59 = vld [vmem:[#allocation2 + $0x38] sm:$0xff]  ;;  %v176_v60 = vsel %vm91_vm0, %v154_v54, 0.0  ;;  %v202_v61 = vmul.f32 %v151_v24, %v527_v7  ;;  %v157_v13 = vld [vmem:[#allocation2 + $0x48] sm:$0xff]  ;;  %v158_v15 = vld [vmem:[#allocation2 + $0x50] sm:$0xff] }
  0x17   :  { %v125_v30 = vadd.f32 %v124_v19, %v123_v23  ;;  %v592_v63 = vsel %vm91_vm0, %v580_v56, 0.0  ;;  %v178_v4 = vsel %vm91_vm0, %v155_v59, 0.0  ;;  %v203_v6 = vmul.f32 %v152_v31, %v531_v10  ;;  %v159_v19 = vld [vmem:[#allocation2 + $0x58] sm:$0xff]  ;;  %v161_v27 = vld [vmem:[#allocation2 + $0x68] sm:$0xff] }
  0x18   :  { %v173_v55 = vadd.f32 %v172_v37, %v171_v42  ;;  %v215_v8 = vsel %vm91_vm0, %v199_v46, 0.0  ;;  %v216_v9 = vsel %vm91_vm0, %v200_v47, 0.0  ;;  %v218_v11 = vsel %vm91_vm0, %v201_v48, 0.0  ;;  %v249_v46 = vld [vmem:[#allocation4 + $0x8] sm:$0xff]  ;;  %v610_v47 = vld [vmem:[#allocation4 + $0x10] sm:$0xff] }
  0x19   :  { %v127_v38 = vadd.f32 %v126_v26, %v125_v30  ;;  %v180_v17 = vsel %vm91_vm0, %v156_v5, 0.0  ;;  %v217_v18 = vadd.f32 %v216_v9, %v215_v8  ;;  %v182_v20 = vsel %vm91_vm0, %v157_v13, 0.0  ;;  %v160_v26 = vld [vmem:[#allocation2 + $0x60] sm:$0xff] }
  0x1a   :  { %v175_v0 = vadd.f32 %v174_v45, %v173_v55  ;;  %v184_v21 = vsel %vm91_vm0, %v158_v15, 0.0  ;;  %v204_v23 = vmul.f32 %v153_v41, %v535_v14  ;;  %v220_v24 = vsel %vm91_vm0, %v202_v61, 0.0  ;;  %v162_v61 = vld [vmem:[#allocation2 + $0x70] sm:$0xff] }
  0x1b   :  { %v129_v51 = vadd.f32 %v128_v35, %v127_v38  ;;  %v186_v31 = vsel %vm91_vm0, %v159_v19, 0.0  ;;  %v219_v32 = vadd.f32 %v218_v11, %v217_v18  ;;  %v188_v35 = vsel %vm91_vm0, %v160_v26, 0.0  ;;  %v252_v18 = vld [vmem:[#allocation4 + $0x20] sm:$0xff] }
  0x1c   :  { %v177_v16 = vadd.f32 %v176_v60, %v175_v0  ;;  %v205_v37 = vmul.f32 %v154_v54, %v542_v22  ;;  %v222_v38 = vsel %vm91_vm0, %v203_v6, 0.0  ;;  %v206_v41 = vmul.f32 %v155_v59, %v547_v28  ;;  %v251_v0 = vld [vmem:[#allocation4 + $0x18] sm:$0xff] }
  0x1d   :  { %v131_v62 = vadd.f32 %v130_v36, %v129_v51  ;;  %v190_v36 = vsel %vm91_vm0, %v161_v27, 0.0  ;;  %v221_v45 = vadd.f32 %v220_v24, %v219_v32  ;;  %v224_v48 = vsel %vm91_vm0, %v204_v23, 0.0 }
  0x1e   :  { %v179_v30 = vadd.f32 %v178_v4, %v177_v16  ;;  %v267_v55 = vsel %vm91_vm0, %v249_v46, 0.0  ;;  %v269_v54 = vsel %vm91_vm0, %v610_v47, 0.0  ;;  %v192_v4 = vsel %vm91_vm0, %v162_v61, 0.0 }
  0x1f   :  { %v133_v12 = vadd.f32 %v132_v39, %v131_v62  ;;  %v223_v62 = vadd.f32 %v222_v38, %v221_v45  ;;  %v207_v6 = vmul.f32 %v156_v5, %v549_v29  ;;  %v226_v8 = vsel %vm91_vm0, %v205_v37, 0.0  ;;  %v253_v37 = vld [vmem:[#allocation4 + $0x28] sm:$0xff] }
  0x20   :  { %v181_v42 = vadd.f32 %v180_v17, %v179_v30  ;;  %v271_v9 = vsel %vm91_vm0, %v251_v0, 0.0  ;;  %v228_v24 = vsel %vm91_vm0, %v206_v41, 0.0 }
  0x21   :  { %v135_v25 = vadd.f32 %v134_v40, %v133_v12  ;;  %v248_v40 = vld [vmem:[#allocation4] sm:$0xff]  ;;  %v163_v12 = vld [vmem:[#allocation2 + $0x78] sm:$0xff]  ;;  %v225_v17 = vadd.f32 %v224_v48, %v223_v62 }
  0x22   :  { %v266_v51 = vsel %vm91_vm0, %v248_v40, 0.0  ;;  %v255_v62 = vld [vmem:[#allocation4 + $0x38] sm:$0xff] }
  0x23   :  { %v137_v39 = vadd.f32 %v136_v52, %v135_v25  ;;  %v183_v52 = vadd.f32 %v182_v20, %v181_v42  ;;  %v268_v59 = vadd.f32 %v267_v55, %v266_v51  ;;  %v208_v20 = vmul.f32 %v157_v13, %v551_v33 }
  0x24   :  { %v273_v25 = vsel %vm91_vm0, %v252_v18, 0.0  ;;  %v227_v32 = vadd.f32 %v226_v8, %v225_v17  ;;  %v230_v13 = vsel %vm91_vm0, %v207_v6, 0.0  ;;  %v275_v42 = vsel %vm91_vm0, %v253_v37, 0.0 }
  0x25   :  { %v139_v60 = vadd.f32 %v138_v53, %v137_v39  ;;  %v185_v16 = vadd.f32 %v184_v21, %v183_v52  ;;  %v270_v23 = vadd.f32 %v269_v54, %v268_v59  ;;  %v194_v53 = vsel %vm91_vm0, %v163_v12, 0.0 }
  0x26   :  { %v209_v21 = vmul.f32 %v158_v15, %v553_v34  ;;  %v210_v39 = vmul.f32 %v159_v19, %v564_v43  ;;  %v211_v51 = vmul.f32 %v160_v26, %v566_v44  ;;  %v212_v55 = vmul.f32 %v161_v27, %v572_v49 }
  0x27   :  { %v141_v11 = vadd.f32 %v140_v57, %v139_v60  ;;  %v187_v30 = vadd.f32 %v186_v31, %v185_v16  ;;  %v272_v38 = vadd.f32 %v271_v9, %v270_v23  ;;  %v113_v57 = vld [vmem:[%s725_s5] sm:$0xff]  ;;  %v254_v31 = vld [vmem:[#allocation4 + $0x30] sm:$0xff]  ;;  %v232_v54 = vsel %vm91_vm0, %v208_v20, 0.0  ;;  %v257_v20 = vld [vmem:[#allocation4 + $0x48] sm:$0xff] }
  0x28   :  { %v277_v15 = vsel %vm91_vm0, %v254_v31, 0.0  ;;  %v213_v6 = vmul.f32 %v162_v61, %v574_v50  ;;  %v301_v8 = vmul.f32 %v248_v40, %v515_v1  ;;  %v256_v9 = vld [vmem:[#allocation4 + $0x40] sm:$0xff]  ;;  %v214_v16 = vmul.f32 %v163_v12, %v580_v56 }
  0x29   :  { %v143_v5 = vadd.f32 %v586_v58, %v141_v11  ;;  %v189_v45 = vadd.f32 %v188_v35, %v187_v30  ;;  %v229_v58 = vadd.f32 %v228_v24, %v227_v32  ;;  %v274_v48 = vadd.f32 %v273_v25, %v272_v38  ;;  %v164_v61 = vld [vmem:[%s724_s4] sm:$0xff]  ;;  %v258_v38 = vld [vmem:[#allocation4 + $0x50] sm:$0xff] }
  0x2a   :  { %v279_v35 = vsel %vm91_vm0, %v255_v62, 0.0  ;;  %v302_v11 = vmul.f32 %v249_v46, %v517_v2  ;;  %v236_v17 = vsel %vm91_vm0, %v210_v39, 0.0  ;;  %v281_v1 = vsel %vm91_vm0, %v256_v9, 0.0 }
  0x2b   :  { %v145_v41 = vadd.f32 %v592_v63, %v143_v5  ;;  %v191_v19 = vadd.f32 %v190_v36, %v189_v45  ;;  %v231_v52 = vadd.f32 %v230_v13, %v229_v58  ;;  %v276_v59 = vadd.f32 %v275_v42, %v274_v48  ;;  %v260_v48 = vld [vmem:[#allocation4 + $0x60] sm:$0xff] }
  0x2c   :  { %v234_v63 = vsel %vm91_vm0, %v209_v21, 0.0  ;;  %v303_v40 = vmul.f32 %v610_v47, %v519_v3  ;;  %v304_v25 = vmul.f32 %v251_v0, %v527_v7  ;;  %v238_v2 = vsel %vm91_vm0, %v211_v51, 0.0  ;;  %v259_v0 = vld [vmem:[#allocation4 + $0x58] sm:$0xff] }
  0x2d   :  { %v146_v60 = vadd.f32 %v145_v41, %v113_v57  ;;  %v193_v26 = vadd.f32 %v192_v4, %v191_v19  ;;  %v233_v27 = vadd.f32 %v232_v54, %v231_v52  ;;  %v278_v36 = vadd.f32 %v277_v15, %v276_v59 }
  0x2e   :  { %v283_v46 = vsel %vm91_vm0, %v257_v20, 0.0  ;;  %v305_v5 = vmul.f32 %v252_v18, %v531_v10  ;;  %v317_v12 = vsel %vm91_vm0, %v301_v8, 0.0  ;;  %v318_v3 = vsel %vm91_vm0, %v302_v11, 0.0  ;;  %v262_v8 = vld [vmem:[#allocation4 + $0x70] sm:$0xff] }
  0x2f   :  { %147 = vst.msk [vmem:[%s725_s5] sm:$0xff] %vm91_vm0, %v146_v60  ;;  %v195_v23 = vadd.f32 %v194_v53, %v193_v26  ;;  %v235_v4 = vadd.f32 %v234_v63, %v233_v27  ;;  %v280_v24 = vadd.f32 %v279_v35, %v278_v36  ;;  %v240_v47 = vsel %vm91_vm0, %v212_v55, 0.0  ;;  %v198_v63 = vld [vmem:[%s723_s3] sm:$0xff] }
  0x30   :  { %v285_v53 = vsel %vm91_vm0, %v258_v38, 0.0  ;;  %v319_v21 = vadd.f32 %v318_v3, %v317_v12  ;;  %v320_v7 = vsel %vm91_vm0, %v303_v40, 0.0  ;;  %v306_v39 = vmul.f32 %v253_v37, %v535_v14  ;;  %v261_v37 = vld [vmem:[#allocation4 + $0x68] sm:$0xff] }
  0x31   :  { %v196_v30 = vadd.f32 %v195_v23, %v164_v61  ;;  %v237_v32 = vadd.f32 %v236_v17, %v235_v4  ;;  %v282_v57 = vadd.f32 %v281_v1, %v280_v24  ;;  %v322_v13 = vsel %vm91_vm0, %v304_v25, 0.0  ;;  %v364_v24 = vld [vmem:[%s724_s4 + $0x8] sm:$0xff] }
  0x32   :  { %v242_v42 = vsel %vm91_vm0, %v213_v6, 0.0  ;;  %v287_v41 = vsel %vm91_vm0, %v259_v0, 0.0  ;;  %v321_v45 = vadd.f32 %v320_v7, %v319_v21  ;;  %v307_v55 = vmul.f32 %v254_v31, %v542_v22 }
  0x33   :  { %197 = vst.msk [vmem:[%s724_s4] sm:$0xff] %vm91_vm0, %v196_v30  ;;  %v239_v10 = vadd.f32 %v238_v2, %v237_v32  ;;  %v284_v18 = vadd.f32 %v283_v46, %v282_v57  ;;  %v324_v54 = vsel %vm91_vm0, %v305_v5, 0.0  ;;  %v244_v15 = vsel %vm91_vm0, %v214_v16, 0.0 }
  0x34   :  { %v289_v60 = vsel %vm91_vm0, %v260_v48, 0.0  ;;  %v323_v19 = vadd.f32 %v322_v13, %v321_v45  ;;  %v308_v59 = vmul.f32 %v255_v62, %v547_v28  ;;  %v326_v6 = vsel %vm91_vm0, %v306_v39, 0.0  ;;  %v263_v62 = vld [vmem:[#allocation4 + $0x78] sm:$0xff] }
  0x35   :  { %v241_v58 = vadd.f32 %v240_v47, %v239_v10  ;;  %v286_v51 = vadd.f32 %v285_v53, %v284_v18  ;;  %v291_v22 = vsel %vm91_vm0, %v261_v37, 0.0  ;;  %v309_v27 = vmul.f32 %v256_v9, %v549_v29 }
  0x36   :  { %v325_v31 = vadd.f32 %v324_v54, %v323_v19  ;;  %v328_v36 = vsel %vm91_vm0, %v307_v55, 0.0  ;;  %v293_v11 = vsel %vm91_vm0, %v262_v8, 0.0  ;;  %v310_v17 = vmul.f32 %v257_v20, %v551_v33 }
  0x37   :  { %v243_v14 = vadd.f32 %v242_v42, %v241_v58  ;;  %v288_v52 = vadd.f32 %v287_v41, %v286_v51  ;;  %v330_v1 = vsel %vm91_vm0, %v308_v59, 0.0  ;;  %v295_v40 = vsel %vm91_vm0, %v263_v62, 0.0 }
  0x38   :  { %v327_v61 = vadd.f32 %v326_v6, %v325_v31  ;;  %v311_v9 = vmul.f32 %v258_v38, %v553_v34  ;;  %v332_v4 = vsel %vm91_vm0, %v309_v27, 0.0  ;;  %v312_v25 = vmul.f32 %v259_v0, %v564_v43 }
  0x39   :  { %v245_v35 = vadd.f32 %v244_v15, %v243_v14  ;;  %v290_v26 = vadd.f32 %v289_v60, %v288_v52  ;;  %v334_v2 = vsel %vm91_vm0, %v310_v17, 0.0  ;;  %v313_v12 = vmul.f32 %v260_v48, %v566_v44 }
  0x3a   :  { %v329_v23 = vadd.f32 %v328_v36, %v327_v61  ;;  %v336_v30 = vsel %vm91_vm0, %v311_v9, 0.0  ;;  %v314_v34 = vmul.f32 %v261_v37, %v572_v49  ;;  %v338_v38 = vsel %vm91_vm0, %v312_v25, 0.0  ;;  %v366_v49 = vld [vmem:[%s723_s3 + $0x8] sm:$0xff] }
  0x3b   :  { %v246_v28 = vadd.f32 %v245_v35, %v198_v63  ;;  %v292_v16 = vadd.f32 %v291_v22, %v290_v26  ;;  %v315_v43 = vmul.f32 %v262_v8, %v574_v50  ;;  %v340_v3 = vsel %vm91_vm0, %v313_v12, 0.0 }
  0x3c   :  { %v331_v33 = vadd.f32 %v330_v1, %v329_v23  ;;  %v316_v44 = vmul.f32 %v263_v62, %v580_v56  ;;  %v342_v53 = vsel %vm91_vm0, %v314_v34, 0.0 }
  0x3d   :  { %247 = vst.msk [vmem:[%s723_s3] sm:$0xff] %vm91_vm0, %v246_v28  ;;  %v294_v29 = vadd.f32 %v293_v11, %v292_v16  ;;  %v344_v7 = vsel %vm91_vm0, %v315_v43, 0.0 }
  0x3e   :  { %v333_v46 = vadd.f32 %v332_v4, %v331_v33  ;;  %v346_v0 = vsel %vm91_vm0, %v316_v44, 0.0 }
  0x3f   :  { %v296_v20 = vadd.f32 %v295_v40, %v294_v29 }
  0x40   :  { %v335_v32 = vadd.f32 %v334_v2, %v333_v46 }
  0x41   :  { %v297_v5 = vadd.f32 %v364_v24, %v296_v20 }
  0x42   :  { %v337_v57 = vadd.f32 %v336_v30, %v335_v32 }
  0x43   :  { %365 = vst.msk [vmem:[%s724_s4 + $0x8] sm:$0xff] %vm91_vm0, %v297_v5 }
  0x44   :  { %v339_v47 = vadd.f32 %v338_v38, %v337_v57 }
  0x46   :  { %v341_v21 = vadd.f32 %v340_v3, %v339_v47 }
  0x48   :  { %v343_v10 = vadd.f32 %v342_v53, %v341_v21 }
  0x4a   :  { %v345_v18 = vadd.f32 %v344_v7, %v343_v10 }
  0x4c   :  { %v347_v39 = vadd.f32 %v346_v0, %v345_v18 }
  0x4e   :  { %v348_v50 = vadd.f32 %v366_v49, %v347_v39 }
  0x50   :  { %367 = vst.msk [vmem:[%s723_s3 + $0x8] sm:$0xff] %vm91_vm0, %v348_v50 }
  0x51   :  { %362 = vsyncpa [#allocation3], 1 }
  0x52   :  { %363 = vsyncpa [#allocation5], 1 }

</bundles_post_ra>
